<compile_context>
chip_gen: v6e
topology: v6e:2x2x1
jax: 0.10.0
libtpu: 0.0.40
codegen_flags: <defaults>
</compile_context>

<pallas_src>
import functools

import numpy as np
import jax
import jax.numpy as jnp
from jax.experimental import pallas as pl
from jax.experimental.pallas import tpu as pltpu


def pos_enc_kernel(t_ref, onehot_ref, freq_ref, phase_ref, out_ref, *, packed):
    """out[r, l] = sin(t[r, l // E] * inv_freq[l] + phase[l])."""
    t_blk = t_ref[...].astype(jnp.float32)                 # (tr, rpg); exact for t < 2**24
    if packed:
        # Broadcast each packed time value across its E-lane group with one small
        # MXU matmul (MXU slot is idle here; keeps the VALU free for mul+add).
        t_b = jnp.dot(t_blk, onehot_ref[...], preferred_element_type=jnp.float32)
    else:
        t_b = t_blk                                        # (tr, 1) broadcasts over lanes
    angle = t_b * freq_ref[...] + phase_ref[...]           # (tr, width)
    out_ref[...] = jnp.sin(angle)                          # cos(x) == sin(x + pi/2)


def positional_encoding(t, embedding_size, n=10000):
    """Pallas equivalent of PositionalEncoding.forward(t). t: int array (B,)."""
    B = int(t.shape[0])
    E = int(embedding_size)
    assert E % 2 == 0, "embedding_size must be even"

    # Host-side (trace-time) per-lane constants, float64 for accuracy.
    i = np.arange(E // 2, dtype=np.float64)
    inv_freq_e = np.repeat(np.power(float(n), -2.0 * i / float(E)), 2)   # (E,)
    phase_e = np.where(np.arange(E) % 2 == 1, np.pi / 2.0, 0.0)          # even->sin, odd->cos

    # ---- lane-dense output layout (always full-width vst) -------------------
    if E % 128 == 0:
        rpg, width = 1, E
        freq_lane, phase_lane = inv_freq_e, phase_e
    elif E < 128 and 128 % E == 0:
        # Pack 128//E batch rows into each 128-lane output row.
        rpg, width = 128 // E, 128
        freq_lane = np.tile(inv_freq_e, rpg)
        phase_lane = np.tile(phase_e, rpg)
    else:
        # Pad E up to the next multiple of 128; wrapper slices the extra lanes.
        e_pad = ((E + 127) // 128) * 128
        rpg, width = 1, e_pad
        freq_lane = np.concatenate([inv_freq_e, np.zeros(e_pad - E)])
        phase_lane = np.concatenate([phase_e, np.zeros(e_pad - E)])

    # One-hot (rpg, width) lane-group map for the packed path (ones when rpg==1).
    lane = np.arange(width)
    onehot_np = (lane[None, :] // E == np.arange(rpg)[:, None]).astype(np.float32)

    num_rows = -(-B // rpg)                                 # ceil(B / rpg)

    # ---- row-block sizing (VMEM-aware, incl. lane-padded t tile) ------------
    out_row_bytes = width * 4
    t_row_bytes = 128 * 4            # (tr, rpg) int32 tile pads its lane dim to 128
    budget = 8 << 20                 # stays well under v5e 16 MiB / v7x 32 MiB scoped defaults
    cap = min((1 << 20) // max(out_row_bytes, 1),                  # ~1 MiB of output / block
              budget // (2 * (out_row_bytes + t_row_bytes)))       # double-buffered out + t
    cap = max(8, (cap // 8) * 8)

    if num_rows <= cap:
        tr = num_rows                # single block; no forced split on 1-TC chips
        num_rows_pad = num_rows
    else:
        tr = cap                     # multiple of 8 -> legal block; >=2 steps, v7x shardable
        num_rows_pad = ((num_rows + tr - 1) // tr) * tr
    grid = (num_rows_pad // tr,)

    # ---- operands ------------------------------------------------------------
    total_B = num_rows_pad * rpg
    t_arr = t.astype(jnp.int32)
    if total_B != B:
        t_arr = jnp.pad(t_arr, (0, total_B - B))            # padded rows computed, then sliced
    t_packed = t_arr.reshape(num_rows_pad, rpg)

    inv_freq = jnp.asarray(freq_lane, dtype=jnp.float32).reshape(1, width)
    phase = jnp.asarray(phase_lane, dtype=jnp.float32).reshape(1, width)
    onehot = jnp.asarray(onehot_np)                          # (rpg, width)

    # Explicit VMEM limit matching the real footprint (+ slack).
    const_bytes = (2 + rpg) * width * 4
    vmem_limit = 2 * tr * (out_row_bytes + t_row_bytes) + 4 * const_bytes + (4 << 20)
    vmem_limit = int(min(max(vmem_limit, 8 << 20), 64 << 20))

    kernel = functools.partial(pos_enc_kernel, packed=(rpg > 1))
    out = pl.pallas_call(
        kernel,
        out_shape=jax.ShapeDtypeStruct((num_rows_pad, width), jnp.float32),
        grid=grid,
        in_specs=[
            pl.BlockSpec((tr, rpg), lambda r: (r, 0)),       # time steps (lane-padded in VMEM)
            pl.BlockSpec((rpg, width), lambda r: (0, 0)),    # resident one-hot constant
            pl.BlockSpec((1, width), lambda r: (0, 0)),      # resident inv_freq constant
            pl.BlockSpec((1, width), lambda r: (0, 0)),      # resident phase constant
        ],
        out_specs=pl.BlockSpec((tr, width), lambda r: (r, 0)),
        compiler_params=pltpu.CompilerParams(
            dimension_semantics=("parallel",),
            vmem_limit_bytes=vmem_limit,
        ),
    )(t_packed, onehot, inv_freq, phase)

    # Row-major unpack back to (B, E); pure wrapper-side layout plumbing.
    return out.reshape(num_rows_pad * rpg, width // rpg)[:B, :E]


def _reference(t, embedding_size, n=10000, max_time_steps=1000):
    # Plain-JAX replica of the PyTorch __init__ table + forward gather.
    i = jnp.arange(embedding_size // 2, dtype=jnp.float32)
    k = jnp.arange(max_time_steps, dtype=jnp.float32)[:, None]
    freqs = k / (float(n) ** (2.0 * i / float(embedding_size)))
    table = jnp.zeros((max_time_steps, embedding_size), jnp.float32)
    table = table.at[:, 0::2].set(jnp.sin(freqs))
    table = table.at[:, 1::2].set(jnp.cos(freqs))
    return table[t, :]


if __name__ == "__main__":
    max_time_steps = 1000
    # atol 2e-4: sin(x + pi/2) fusion + precomputed reciprocal freqs differ from the
    # table's cos / divide path by a few 1e-5 at the largest (t ~ 1000 rad) angles.
    tol = dict(rtol=1e-5, atol=2e-4)

    # Config 1: E < 128, 128 % E == 0 -> lane-dense packed path (4 rows per 128 lanes).
    t1 = jax.random.randint(jax.random.PRNGKey(0), (8,), 0, max_time_steps, dtype=jnp.int32)
    out1 = jax.block_until_ready(positional_encoding(t1, 32))
    assert out1.shape == (8, 32)
    assert jnp.allclose(out1, _reference(t1, 32), **tol), "mismatch (E=32 packed)"

    # Config 2: E multiple of 128 -> plain per-row path, single block.
    t2 = jax.random.randint(jax.random.PRNGKey(1), (16,), 0, max_time_steps, dtype=jnp.int32)
    out2 = jax.block_until_ready(positional_encoding(t2, 128))
    assert out2.shape == (16, 128)
    assert jnp.allclose(out2, _reference(t2, 128), **tol), "mismatch (E=128)"

    # Config 3: awkward E (128 % E != 0) -> lane-padded output, sliced in wrapper.
    t3 = jax.random.randint(jax.random.PRNGKey(2), (6,), 0, max_time_steps, dtype=jnp.int32)
    out3 = jax.block_until_ready(positional_encoding(t3, 48))
    assert out3.shape == (6, 48)
    assert jnp.allclose(out3, _reference(t3, 48), **tol), "mismatch (E=48 padded)"

    # Config 4: packed path with B not a multiple of rpg -> B padded, rows sliced.
    t4 = jax.random.randint(jax.random.PRNGKey(3), (6,), 0, max_time_steps, dtype=jnp.int32)
    out4 = jax.block_until_ready(positional_encoding(t4, 32))
    assert out4.shape == (6, 32)
    assert jnp.allclose(out4, _reference(t4, 32), **tol), "mismatch (E=32, B=6 padded)"

    print("KERNEL_OK")
</pallas_src>

<mosaic_0001>
module attributes {stable_mosaic.version = 11 : i64} {
  func.func @pos_enc_kernel(%arg0: i32, %arg1: memref<2x4xi32, #tpu.memory_space<vmem>>, %arg2: memref<4x128xf32, #tpu.memory_space<vmem>>, %arg3: memref<1x128xf32, #tpu.memory_space<vmem>>, %arg4: memref<1x128xf32, #tpu.memory_space<vmem>>, %arg5: memref<2x128xf32, #tpu.memory_space<vmem>>) attributes {dimension_semantics = [#tpu.dimension_semantics<parallel>], iteration_bounds = array<i64: 1>, scalar_prefetch = 0 : i64, scratch_operands = 0 : i64, tpu.core_type = #tpu.core_type<tc>, window_params = [{transform_indices = @transform_0, window_bounds = array<i64: 2, 4>}, {pipeline_mode = #tpu.pipeline_mode<synchronous>, transform_indices = @transform_1, window_bounds = array<i64: 4, 128>}, {pipeline_mode = #tpu.pipeline_mode<synchronous>, transform_indices = @transform_2, window_bounds = array<i64: 1, 128>}, {pipeline_mode = #tpu.pipeline_mode<synchronous>, transform_indices = @transform_3, window_bounds = array<i64: 1, 128>}, {transform_indices = @transform_4, window_bounds = array<i64: 2, 128>}]} {
    %c0 = arith.constant 0 : index
    %c0_0 = arith.constant 0 : index
    %0 = vector.load %arg1[%c0, %c0_0] : memref<2x4xi32, #tpu.memory_space<vmem>>, vector<2x4xi32>
    %1 = arith.sitofp %0 : vector<2x4xi32> to vector<2x4xf32>
    %c0_1 = arith.constant 0 : index
    %c0_2 = arith.constant 0 : index
    %2 = vector.load %arg2[%c0_1, %c0_2] : memref<4x128xf32, #tpu.memory_space<vmem>>, vector<4x128xf32>
    %cst = arith.constant dense<0.000000e+00> : vector<2x128xf32>
    %3 = tpu.matmul %1, %2, %cst {dimension_numbers = #tpu.dot_dimension_numbers<[1], [0], [0], [1], [0, 0, 1, 1], [], []>} : vector<2x4xf32>, vector<4x128xf32>, vector<2x128xf32> -> vector<2x128xf32>
    %c0_3 = arith.constant 0 : index
    %c0_4 = arith.constant 0 : index
    %4 = vector.load %arg3[%c0_3, %c0_4] : memref<1x128xf32, #tpu.memory_space<vmem>>, vector<1x128xf32>
    %5 = vector.broadcast %4 : vector<1x128xf32> to vector<2x128xf32>
    %6 = arith.mulf %3, %5 : vector<2x128xf32>
    %c0_5 = arith.constant 0 : index
    %c0_6 = arith.constant 0 : index
    %7 = vector.load %arg4[%c0_5, %c0_6] : memref<1x128xf32, #tpu.memory_space<vmem>>, vector<1x128xf32>
    %8 = vector.broadcast %7 : vector<1x128xf32> to vector<2x128xf32>
    %9 = arith.addf %6, %8 : vector<2x128xf32>
    %10 = math.sin %9 : vector<2x128xf32>
    %c0_7 = arith.constant 0 : index
    %c0_8 = arith.constant 0 : index
    %11 = vector.load %arg5[%c0_7, %c0_8] : memref<2x128xf32, #tpu.memory_space<vmem>>, vector<2x128xf32>
    tpu.vector_store %arg5[%c0_7, %c0_8], %10 {strides = array<i32>} : memref<2x128xf32, #tpu.memory_space<vmem>>, vector<2x128xf32>,
    return
  }
  func.func @transform_0(%arg0: i32) -> (i32, i32) {
    %c0_i32 = arith.constant 0 : i32
    %c0_i32_0 = arith.constant 0 : i32
    return %arg0, %c0_i32 : i32, i32
  }
  func.func @transform_1(%arg0: i32) -> (i32, i32) {
    %c0_i32 = arith.constant 0 : i32
    %c0_i32_0 = arith.constant 0 : i32
    %c0_i32_1 = arith.constant 0 : i32
    return %c0_i32, %c0_i32_0 : i32, i32
  }
  func.func @transform_2(%arg0: i32) -> (i32, i32) {
    %c0_i32 = arith.constant 0 : i32
    %c0_i32_0 = arith.constant 0 : i32
    %c0_i32_1 = arith.constant 0 : i32
    return %c0_i32, %c0_i32_0 : i32, i32
  }
  func.func @transform_3(%arg0: i32) -> (i32, i32) {
    %c0_i32 = arith.constant 0 : i32
    %c0_i32_0 = arith.constant 0 : i32
    %c0_i32_1 = arith.constant 0 : i32
    return %c0_i32, %c0_i32_0 : i32, i32
  }
  func.func @transform_4(%arg0: i32) -> (i32, i32) {
    %c0_i32 = arith.constant 0 : i32
    %c0_i32_0 = arith.constant 0 : i32
    return %arg0, %c0_i32 : i32, i32
  }
}

</mosaic_0001>

<bundles_post_ra>
// kernel: tpu_custom_call.1
= control target key start
LH: loop header
LB: loop body
LE: loop exit
PB: predicated region body
PF: predicated region fallthrough
CT: control target
= control target key end

     0   :  { %9 = vsyncpa [#allocation3], 0  ;;  %s432_s0 = inlined_call_operand.hbm [shape: s32[2,4], index: 0, kind: input, shape index: {}]   ;;  %s433_s1 = inlined_call_operand.hbm [shape: f32[4,128], index: 1, kind: input, shape index: {}]   ;;  %s434_s2 = inlined_call_operand.vmem [shape: f32[1,128], index: 2, kind: input, shape index: {}]   ;;  %s435_s3 = inlined_call_operand.vmem [shape: f32[1,128], index: 3, kind: input, shape index: {}]   ;;  %s436_s4 = inlined_call_operand.hbm [shape: f32[2,128], index: 4, kind: output, shape index: {}]  }
   0x1   :  { %10 = vsyncpa [#allocation6], 0 }
   0x2   :  { %11 = vsyncpa [#allocation4], 0  ;;  %s360_s15 = smov [#allocation2]   ;;  %s361_s17 = smov [#allocation5]  }
   0x3   :  { %s18_s16 = sshll.u32 %s360_s15, 4  ;;  %s28_s18 = sshll.u32 %s361_s17, 4  ;;  %s19_s16 = int_to_ptr.vmem [resolvable:$true] %s18_s16  ;;  %s29_s18 = int_to_ptr.vmem [resolvable:$true] %s28_s18 }
   0x4   :  { %s302_s19 = scalar_lea.vmem %s19_s16, 32  ;;  %p307_p1 = scmp.lt.s32.totalorder %s19_s16, %s19_s16 }
   0x5   :  { %p303_p0 = scmp.ne.s32.totalorder %s19_s16, %s302_s19  ;;  %p308_p2 = scmp.lt.s32.totalorder %s302_s19, %s302_s19 }
   0x7   :  { %p309_p3 = por %p308_p2, %p307_p1 }
   0x9   :  { %p310_p4 = pnand %p309_p3, %p303_p0 }
   0xb   :  { %313 = shalt.err (!%p310_p4)
}
   0xc   :  { %21 = dma.hbm_to_vmem [thread:$0]  %s432_s0, 32, %s19_s16, [#allocation3]  }
   0xd   :  { %s322_s22 = scalar_lea.vmem %s29_s18, 64  ;;  %p327_p6 = scmp.lt.s32.totalorder %s29_s18, %s29_s18 }
   0xe   :  { %p323_p5 = scmp.ne.s32.totalorder %s29_s18, %s322_s22  ;;  %p328_p7 = scmp.lt.s32.totalorder %s322_s22, %s322_s22 }
  0x10   :  { %p329_p8 = por %p328_p7, %p327_p6 }
  0x12   :  { %p330_p9 = pnand %p329_p8, %p323_p5 }
  0x14   :  { %333 = shalt.err (!%p330_p9)
}
  0x15   :  { %31 = dma.hbm_to_vmem [thread:$0]  %s433_s1, 64, %s29_s18, [#allocation6]  }
  0x16   :  { %354 = dma.done.wait [#allocation3], 32  }
  0x17   :  { %355 = vsyncadd [#allocation3], 4294967264 }
  0x18   :  { %356 = dma.done.wait [#allocation6], 64  }
  0x19   :  { %357 = vsyncadd [#allocation6], 4294967232  ;;  %v362_v0 = vmov 0.0   ;;  %vm363_vm0 = vmmov 0   ;;  %vm49_vm1 = vcmask 1043456   ;;  %vm45_vm2 = vcmask 31744  }
  0x1a   :  { %270 = vmatprep.subr.mxu0 %v362_v0  ;;  %272 = vmatprep.mubr.msk.f32.mxu0 %vm363_vm0, %v362_v0  ;;  %v44_v1 = vld [vmem:[#allocation5] sm:$0xf]  ;;  %v42_v2 = vld [vmem:[#allocation2] sm:$0x3]  ;;  %v364_v21 = vmov 2102212464  }
  0x1b   :  { %271 = vmatpush3.msk.msra.mxu0 %vm49_vm1, %v44_v1  ;;  %v43_v3 = vcvt.s32.f32 %v42_v2  ;;  %v262_v4 = vld [vmem:[%s434_s2] ss:$0 sm:$0xff]  ;;  %v365_v23 = vmov 920167782   ;;  %v366_v27 = vmov 1326507024  }
  0x1c   :  { %v263_v6 = vld [vmem:[%s435_s3] ss:$0 sm:$0xff]  ;;  %v367_v29 = vmov 683565275   ;;  %v368_v31 = vmov 2475754826  }
  0x1d   :  { %273 = vmatmul.mubr.msk.f32.vlgmr.msra.gmra.mxu0 %vm45_vm2, %v43_v3  ;;  %v369_v34 = vmov 2131351028   ;;  %s370_s2 = smov [#allocation7]  }
  0x1e   :  { %s250_s3 = sshll.u32 %s370_s2, 4  ;;  %s251_s3 = int_to_ptr.vmem [resolvable:$true] %s250_s3 }
  0x1f   :  { %s334_s27 = scalar_lea.vmem %s251_s3, 32  ;;  %p339_p11 = scmp.lt.s32.totalorder %s251_s3, %s251_s3 }
  0x20   :  { %p335_p10 = scmp.ne.s32.totalorder %s251_s3, %s334_s27  ;;  %p340_p12 = scmp.lt.s32.totalorder %s334_s27, %s334_s27 }
  0x22   :  { %p341_p13 = por %p340_p12, %p339_p11 }
  0x24   :  { %p342_p0 = pnand %p341_p13, %p335_p10 }
  0xdd   :  { %v119_v5 = vpop.f32.mrf.mxu0 }
  0xde   :  { %v130_v7 = vmul.f32 %v262_v4, %v119_v5 }
  0xdf   :  { %v274_v8 = vpop.f32.mrf.mxu0 }
  0xe0   :  { %v408_v9 = vadd.f32 %v263_v6, %v130_v7 }
  0xe2   :  { %v142_v10 = vand.u32 2139095040, %v408_v9  ;;  %v139_v11 = vand.u32 2147483647, %v408_v9  ;;  %vm141_vm10 = vcmp.lt.s32.totalorder %v408_v9, 0  ;;  %vm231_vm15 = vweird.f32 %v408_v9 }
  0xe4   :  { %v143_v12 = vshrl.u32 %v142_v10, 23  ;;  %v146_v14 = vand.u32 8388607, %v139_v11  ;;  %vm140_vm11 = vcmp.le.f32.partialorder %v139_v11, 0.7853982 }
  0xe6   :  { %v264_v13 = vadd.s32 4294967169, %v143_v12  ;;  %v147_v17 = vor.u32 8388608, %v146_v14 }
  0xe8   :  { %v149_v15 = vadd.s32 1, %v264_v13  ;;  %v187_v25 = vshll.u32 %v147_v17, 8 }
  0xea   :  { %vm150_vm3 = vcmp.gt.s32.totalorder %v149_v15, 0 }
  0xeb   :  { %v151_v16 = vsel %vm150_vm3, %v149_v15, 0 }
  0xec   :  { %v153_v18 = vand.u32 31, %v151_v16  ;;  %v152_v19 = vshrl.u32 %v151_v16, 5 }
  0xee   :  { %v154_v20 = vsub.s32 32, %v153_v18  ;;  %v165_v22 = vshll.u32 %v364_v21, %v153_v18  ;;  %v168_v24 = vshll.u32 %v365_v23, %v153_v18  ;;  %v156_v30 = vshll.u32 %v367_v29, %v153_v18 }
  0xef   :  { %v159_v33 = vshll.u32 %v368_v31, %v153_v18  ;;  %v162_v36 = vshll.u32 %v369_v34, %v153_v18  ;;  %vm174_vm4 = vcmp.lt.s32.totalorder %v152_v19, 4  ;;  %vm171_vm5 = vcmp.lt.s32.totalorder %v152_v19, 1 }
  0xf0   :  { %v166_v26 = vshrl.u32 %v365_v23, %v154_v20  ;;  %v169_v28 = vshrl.u32 %v366_v27, %v154_v20  ;;  %v157_v32 = vshrl.u32 %v368_v31, %v154_v20  ;;  %v160_v35 = vshrl.u32 %v369_v34, %v154_v20 }
  0xf1   :  { %v163_v37 = vshrl.u32 %v364_v21, %v154_v20  ;;  %v155_v41 = vshrl.u32 %v367_v29, %v154_v20  ;;  %vm172_vm6 = vcmp.lt.s32.totalorder %v152_v19, 2  ;;  %vm173_vm7 = vcmp.lt.s32.totalorder %v152_v19, 3 }
  0xf2   :  { %v167_v38 = vor.u32 %v166_v26, %v165_v22  ;;  %v170_v39 = vor.u32 %v169_v28, %v168_v24  ;;  %v158_v40 = vor.u32 %v157_v32, %v156_v30  ;;  %v161_v42 = vor.u32 %v160_v35, %v159_v33 }
  0xf3   :  { %v164_v43 = vor.u32 %v163_v37, %v162_v36 }
  0xf4   :  { %v180_v44 = vsel %vm174_vm4, %v167_v38, 920167782  ;;  %v184_v45 = vsel %vm174_vm4, %v170_v39, 1326507024  ;;  %v179_v47 = vsel %vm171_vm5, %v158_v40, %v161_v42  ;;  %v175_v50 = vsel %vm171_vm5, %v155_v41, %v158_v40 }
  0xf5   :  { %v176_v46 = vsel %vm174_vm4, %v164_v43, 2102212464  ;;  %v181_v48 = vsel %vm173_vm7, %v164_v43, %v180_v44  ;;  %v183_v49 = vsel %vm171_vm5, %v161_v42, %v164_v43  ;;  %v185_v53 = vsel %vm173_vm7, %v167_v38, %v184_v45 }
  0xf6   :  { %v177_v51 = vsel %vm173_vm7, %v161_v42, %v176_v46  ;;  %v182_v52 = vsel %vm172_vm6, %v179_v47, %v181_v48  ;;  %v186_v54 = vsel %vm172_vm6, %v183_v49, %v185_v53 }
  0xf7   :  { %v414_v55 = vmul.u32.u64.low %v187_v25, %v182_v52  ;;  %v415_v56 = vmul.u32.u64.high %v187_v25, %v182_v52, %v414_v55  ;;  %v417_v57 = vmul.u32.u64.low %v187_v25, %v186_v54  ;;  %v418_v58 = vmul.u32.u64.high %v187_v25, %v186_v54, %v417_v57 }
  0xf8   :  { %v178_v59 = vsel %vm172_vm6, %v175_v50, %v177_v51 }
  0xf9   :  { %v197_v60 = vadd.s32 1, %v415_v56  ;;  %v194_v61 = vmul.u32 %v187_v25, %v178_v59  ;;  %vm196_vm8 = vc.u32 %v418_v58, %v414_v55  ;;  %v195_v10 = vadd.s32 %v414_v55, %v418_v58 }
  0xfb   :  { %v198_v62 = vsel %vm196_vm8, %v197_v60, %v415_v56 }
  0xfc   :  { %v199_v63 = vadd.s32 %v198_v62, %v194_v61 }
  0xfe   :  { %v200_v0 = vadd.s32 536870912, %v199_v63 }
 0x100   :  { %v201_v1 = vshrl.u32 %v200_v0, 30 }
 0x102   :  { %v202_v2 = vshll.u32 %v201_v1, 30  ;;  %v225_v24 = vsub.s32 4, %v201_v1 }
 0x104   :  { %v203_v3 = vsub.s32 %v199_v63, %v202_v2  ;;  %v226_v27 = vsel %vm141_vm10, %v225_v24, %v201_v1 }
 0x105   :  { %v228_v28 = vsel %vm140_vm11, 0, %v226_v27 }
 0x106   :  { %v205_v4 = vsub.s32 0, %v203_v3  ;;  %v232_v29 = vadd.s32 3, %v228_v28 }
 0x108   :  { %v265_v5 = vmin.u32 %v205_v4, %v203_v3  ;;  %v233_v30 = vand.u32 3, %v232_v29 }
 0x10a   :  { %v207_v6 = vclz %v265_v5  ;;  %vm238_vm12 = vcmp.eq.s32.totalorder %v233_v30, 2  ;;  %vm235_vm13 = vcmp.eq.s32.totalorder %v233_v30, 0  ;;  %vm234_vm14 = vcmp.lt.s32.totalorder %v233_v30, 2 }
 0x10c   :  { %v266_v7 = vadd.s32 4294967294, %v207_v6 }
 0x10e   :  { %vm267_vm9 = vcmp.lt.s32.totalorder %v266_v7, 0 }
 0x10f   :  { %v210_v8 = vsel %vm267_vm9, 0, %v266_v7 }
 0x110   :  { %v211_v12 = vsub.s32 32, %v210_v8  ;;  %v215_v13 = vsub.s32 4294967266, %v210_v8  ;;  %v212_v14 = vshll.u32 %v203_v3, %v210_v8 }
 0x112   :  { %v213_v15 = vshrl.u32 %v195_v10, %v211_v12  ;;  %v216_v16 = vadd.s32 127, %v215_v13 }
 0x114   :  { %v214_v17 = vor.u32 %v213_v15, %v212_v14  ;;  %v217_v18 = vshll.u32 %v216_v16, 23 }
 0x116   :  { %v218_v19 = vor.u32 4788187, %v217_v18  ;;  %v221_v21 = vcvt.s32.f32 %v214_v17 }
 0x118   :  { %v219_v20 = vand.u32 2147483647, %v218_v19 }
 0x11a   :  { %v222_v22 = vmul.f32 %v221_v21, %v219_v20 }
 0x11c   :  { %v223_v23 = vxor.u32 2147483648, %v222_v22 }
 0x11e   :  { %v224_v25 = vsel %vm141_vm10, %v223_v23, %v222_v22 }
 0x11f   :  { %v227_v26 = vsel %vm140_vm11, %v408_v9, %v224_v25 }
 0x120   :  { %290 = vcosq.f32 %v227_v26 }
 0x121   :  { %292 = vsinq.f32 %v227_v26 }
 0x12d   :  { %v291_v31 = vpop.eup %290 }
 0x12e   :  { %v293_v32 = vpop.eup %292  ;;  %v239_v33 = vxor.u32 2147483648, %v291_v31 }
 0x12f   :  { %v236_v34 = vxor.u32 2147483648, %v293_v32 }
 0x130   :  { %v240_v35 = vsel %vm238_vm12, %v239_v33, %v293_v32 }
 0x131   :  { %v237_v11 = vsel %vm235_vm13, %v291_v31, %v236_v34 }
 0x132   :  { %v241_v36 = vsel %vm234_vm14, %v237_v11, %v240_v35 }
 0x133   :  { %v242_v37 = vsel %vm231_vm15, nan, %v241_v36 }
 0x134   :  { %243 = vst [vmem:[#allocation7] sm:$0x3] %v242_v37 }
 0x135   :  { %345 = shalt.err (!%p342_p0)
}
 0x136   :  { %253 = dma.vmem_to_hbm [thread:$0]  %s251_s3, 32, %s436_s4, [#allocation4]  }
 0x137   :  { %358 = dma.done.wait [#allocation4], 32  }
 0x138   :  { %359 = vsyncadd [#allocation4], 4294967264 }
 0x139   :  { %257 = vsyncpa [#allocation3], 1 }
 0x13a   :  { %258 = vsyncpa [#allocation6], 1 }
 0x13b   :  { %259 = vsyncpa [#allocation4], 1 }

</bundles_post_ra>
